<compile_context>
chip_gen: v6e
topology: v6e:2x2x1
jax: 0.10.0
libtpu: 0.0.40
codegen_flags: <defaults>
</compile_context>

<pallas_src>
import functools

import jax
import jax.numpy as jnp
from jax.experimental import pallas as pl
from jax.experimental.pallas import tpu as pltpu

ALPHA = 1.0
GAMMA = 2.0
LANES = 128
SUBLANES = 8
MAX_BLOCK_ROWS = 1024  # 1024 x 128 x 4B = 512 KiB per input block


def _tile_focal(x, t, alpha, gamma):
    """Elementwise focal loss for one (block_rows, 128) tile, in f32."""
    x = x.astype(jnp.float32)
    t = t.astype(jnp.float32)
    # Numerically-stable BCE-with-logits (matches torch semantics):
    #   bce = max(x, 0) - x*t + log(1 + exp(-|x|))
    bce = jnp.maximum(x, 0.0) - x * t + jnp.log1p(jnp.exp(-jnp.abs(x)))
    pt = jnp.exp(-bce)
    one_minus_pt = 1.0 - pt
    if gamma == 2.0:
        w = one_minus_pt * one_minus_pt          # fast path, no pow
    elif gamma == float(int(gamma)) and gamma >= 0.0:
        w = jnp.ones_like(one_minus_pt)
        for _ in range(int(gamma)):
            w = w * one_minus_pt
    else:
        # clamp avoids NaN from tiny negative rounding of (1 - pt)
        w = jnp.power(jnp.maximum(one_minus_pt, 0.0), gamma)
    return alpha * w * bce


def _focal_loss_kernel(x_ref, t_ref, out_ref, *, alpha, gamma, n):
    i = pl.program_id(0)
    last = pl.num_programs(0) - 1
    block_rows, lanes = x_ref.shape

    @pl.when(i == 0)
    def _():
        out_ref[...] = jnp.zeros_like(out_ref)

    # All non-last blocks hold only real data: no mask needed.
    @pl.when(i < last)
    def _():
        f = _tile_focal(x_ref[...], t_ref[...], alpha, gamma)
        # (block_rows,128) -> (block_rows//8, 8, 128); leading-axis sum is
        # pure VPU vreg addition (no cross-lane traffic).
        out_ref[...] += jnp.sum(f.reshape(block_rows // 8, SUBLANES, lanes), axis=0)

    # Last block: mask the tail (wrapper pad + any out-of-bounds block rows).
    @pl.when(i == last)
    def _():
        f = _tile_focal(x_ref[...], t_ref[...], alpha, gamma)
        row = jax.lax.broadcasted_iota(jnp.int32, (block_rows, lanes), 0)
        lane = jax.lax.broadcasted_iota(jnp.int32, (block_rows, lanes), 1)
        flat = (i * block_rows + row) * lanes + lane
        f = jnp.where(flat < n, f, 0.0)
        out_ref[...] += jnp.sum(f.reshape(block_rows // 8, SUBLANES, lanes), axis=0)


def focal_loss(inputs, targets, alpha=ALPHA, gamma=GAMMA):
    """Mean focal loss over all elements; inputs/targets any (same) shape."""
    assert inputs.shape == targets.shape
    n = inputs.size

    x = inputs.reshape(-1)   # free (row-major) flatten; keep original dtype
    t = targets.reshape(-1)

    # Only pad when the flat size is not already a multiple of 8*128.
    tile_elems = SUBLANES * LANES
    padded = pl.cdiv(n, tile_elems) * tile_elems
    if padded != n:
        x = jnp.pad(x, (0, padded - n))
        t = jnp.pad(t, (0, padded - n))

    rows = padded // LANES                       # multiple of 8
    block_rows = min(MAX_BLOCK_ROWS, rows)       # multiple of 8
    grid_steps = pl.cdiv(rows, block_rows)       # last block may be partial

    x2 = x.reshape(rows, LANES)
    t2 = t.reshape(rows, LANES)

    in_spec = pl.BlockSpec((block_rows, LANES), lambda i: (i, 0))
    out_spec = pl.BlockSpec((SUBLANES, LANES), lambda i: (0, 0))

    kernel = functools.partial(
        _focal_loss_kernel, alpha=float(alpha), gamma=float(gamma), n=n
    )

    partial = pl.pallas_call(
        kernel,
        out_shape=jax.ShapeDtypeStruct((SUBLANES, LANES), jnp.float32),
        grid_spec=pltpu.PrefetchScalarGridSpec(
            num_scalar_prefetch=0,
            grid=(grid_steps,),
            in_specs=[in_spec, in_spec],
            out_specs=out_spec,
        ),
        compiler_params=pltpu.CompilerParams(
            dimension_semantics=("arbitrary",)
        ),
    )(x2, t2)

    # Single tiny cross-lane reduce outside the kernel, then the mean.
    return jnp.sum(partial) / jnp.float32(n)


def _reference_focal_loss(inputs, targets, alpha=ALPHA, gamma=GAMMA):
    x = inputs.astype(jnp.float32)
    t = targets.astype(jnp.float32)
    bce = jnp.maximum(x, 0.0) - x * t + jnp.log1p(jnp.exp(-jnp.abs(x)))
    pt = jnp.exp(-bce)
    return jnp.mean(alpha * (1.0 - pt) ** gamma * bce)


if __name__ == "__main__":
    key = jax.random.PRNGKey(0)
    k1, k2 = jax.random.split(key)

    # Small NCHW-shaped logits and binary targets, as the module implies.
    B, C, H, W = 2, 4, 16, 16
    inputs = jax.random.normal(k1, (B, C, H, W), dtype=jnp.float32)
    targets = jax.random.bernoulli(k2, 0.5, (B, C, H, W)).astype(jnp.float32)

    out = focal_loss(inputs, targets)
    out = jax.block_until_ready(out)

    ref = jax.block_until_ready(_reference_focal_loss(inputs, targets))
    assert jnp.allclose(out, ref, rtol=1e-5, atol=1e-6), (out, ref)

    print("KERNEL_OK")
</pallas_src>

<mosaic_0001>
module attributes {stable_mosaic.version = 11 : i64} {
  func.func @_focal_loss_kernel(%arg0: i32, %arg1: memref<16x128xf32, #tpu.memory_space<vmem>>, %arg2: memref<16x128xf32, #tpu.memory_space<vmem>>, %arg3: memref<8x128xf32, #tpu.memory_space<vmem>>) attributes {dimension_semantics = [#tpu.dimension_semantics<arbitrary>], iteration_bounds = array<i64: 1>, scalar_prefetch = 0 : i64, scratch_operands = 0 : i64, tpu.core_type = #tpu.core_type<tc>, window_params = [{transform_indices = @transform_0, window_bounds = array<i64: 16, 128>}, {transform_indices = @transform_1, window_bounds = array<i64: 16, 128>}, {pipeline_mode = #tpu.pipeline_mode<synchronous>, transform_indices = @transform_2, window_bounds = array<i64: 8, 128>}]} {
    %c0_i32 = arith.constant 0 : i32
    %0 = arith.cmpi eq, %arg0, %c0_i32 : i32
    %1 = arith.extui %0 : i1 to i32
    %c0_i32_0 = arith.constant 0 : i32
    %2 = arith.cmpi ne, %1, %c0_i32_0 : i32
    scf.if %2 {
      %cst = arith.constant 0.000000e+00 : f32
      %9 = vector.broadcast %cst : f32 to vector<8x128xf32>
      %c0 = arith.constant 0 : index
      %c0_5 = arith.constant 0 : index
      %10 = vector.load %arg3[%c0, %c0_5] : memref<8x128xf32, #tpu.memory_space<vmem>>, vector<8x128xf32>
      tpu.vector_store %arg3[%c0, %c0_5], %9 {strides = array<i32>} : memref<8x128xf32, #tpu.memory_space<vmem>>, vector<8x128xf32>,
    } else {
    }
    %c0_i32_1 = arith.constant 0 : i32
    %3 = arith.cmpi slt, %arg0, %c0_i32_1 : i32
    %4 = arith.extui %3 : i1 to i32
    %c0_i32_2 = arith.constant 0 : i32
    %5 = arith.cmpi ne, %4, %c0_i32_2 : i32
    scf.if %5 {
      %c0 = arith.constant 0 : index
      %c0_5 = arith.constant 0 : index
      %9 = vector.load %arg1[%c0, %c0_5] : memref<16x128xf32, #tpu.memory_space<vmem>>, vector<16x128xf32>
      %c0_6 = arith.constant 0 : index
      %c0_7 = arith.constant 0 : index
      %10 = vector.load %arg2[%c0_6, %c0_7] : memref<16x128xf32, #tpu.memory_space<vmem>>, vector<16x128xf32>
      %cst = arith.constant 0.000000e+00 : f32
      %11 = vector.broadcast %cst : f32 to vector<16x128xf32>
      %12 = arith.maximumf %9, %11 : vector<16x128xf32>
      %13 = arith.mulf %9, %10 : vector<16x128xf32>
      %14 = arith.subf %12, %13 : vector<16x128xf32>
      %15 = math.absf %9 : vector<16x128xf32>
      %cst_8 = arith.constant 0.000000e+00 : f32
      %16 = vector.broadcast %cst_8 : f32 to vector<16x128xf32>
      %17 = arith.subf %16, %15 : vector<16x128xf32>
      %18 = math.exp %17 : vector<16x128xf32>
      %19 = math.log1p %18 : vector<16x128xf32>
      %20 = arith.addf %14, %19 : vector<16x128xf32>
      %cst_9 = arith.constant 0.000000e+00 : f32
      %21 = vector.broadcast %cst_9 : f32 to vector<16x128xf32>
      %22 = arith.subf %21, %20 : vector<16x128xf32>
      %23 = math.exp %22 : vector<16x128xf32>
      %cst_10 = arith.constant 1.000000e+00 : f32
      %24 = vector.broadcast %cst_10 : f32 to vector<16x128xf32>
      %25 = arith.subf %24, %23 : vector<16x128xf32>
      %26 = arith.mulf %25, %25 : vector<16x128xf32>
      %cst_11 = arith.constant 1.000000e+00 : f32
      %27 = vector.broadcast %cst_11 : f32 to vector<16x128xf32>
      %28 = arith.mulf %27, %26 : vector<16x128xf32>
      %29 = arith.mulf %28, %20 : vector<16x128xf32>
      %c0_12 = arith.constant 0 : index
      %c0_13 = arith.constant 0 : index
      %30 = vector.load %arg3[%c0_12, %c0_13] : memref<8x128xf32, #tpu.memory_space<vmem>>, vector<8x128xf32>
      %31 = vector.shape_cast %29 : vector<16x128xf32> to vector<2x8x128xf32>
      %cst_14 = arith.constant dense<0.000000e+00> : vector<8x128xf32>
      %32 = vector.multi_reduction <add>, %31, %cst_14 [0] : vector<2x8x128xf32> to vector<8x128xf32>
      %33 = arith.addf %30, %32 : vector<8x128xf32>
      %c0_15 = arith.constant 0 : index
      %c0_16 = arith.constant 0 : index
      %34 = vector.load %arg3[%c0_15, %c0_16] : memref<8x128xf32, #tpu.memory_space<vmem>>, vector<8x128xf32>
      tpu.vector_store %arg3[%c0_15, %c0_16], %33 {strides = array<i32>} : memref<8x128xf32, #tpu.memory_space<vmem>>, vector<8x128xf32>,
    } else {
    }
    %c0_i32_3 = arith.constant 0 : i32
    %6 = arith.cmpi eq, %arg0, %c0_i32_3 : i32
    %7 = arith.extui %6 : i1 to i32
    %c0_i32_4 = arith.constant 0 : i32
    %8 = arith.cmpi ne, %7, %c0_i32_4 : i32
    scf.if %8 {
      %c0 = arith.constant 0 : index
      %c0_5 = arith.constant 0 : index
      %9 = vector.load %arg1[%c0, %c0_5] : memref<16x128xf32, #tpu.memory_space<vmem>>, vector<16x128xf32>
      %c0_6 = arith.constant 0 : index
      %c0_7 = arith.constant 0 : index
      %10 = vector.load %arg2[%c0_6, %c0_7] : memref<16x128xf32, #tpu.memory_space<vmem>>, vector<16x128xf32>
      %cst = arith.constant 0.000000e+00 : f32
      %11 = vector.broadcast %cst : f32 to vector<16x128xf32>
      %12 = arith.maximumf %9, %11 : vector<16x128xf32>
      %13 = arith.mulf %9, %10 : vector<16x128xf32>
      %14 = arith.subf %12, %13 : vector<16x128xf32>
      %15 = math.absf %9 : vector<16x128xf32>
      %cst_8 = arith.constant 0.000000e+00 : f32
      %16 = vector.broadcast %cst_8 : f32 to vector<16x128xf32>
      %17 = arith.subf %16, %15 : vector<16x128xf32>
      %18 = math.exp %17 : vector<16x128xf32>
      %19 = math.log1p %18 : vector<16x128xf32>
      %20 = arith.addf %14, %19 : vector<16x128xf32>
      %cst_9 = arith.constant 0.000000e+00 : f32
      %21 = vector.broadcast %cst_9 : f32 to vector<16x128xf32>
      %22 = arith.subf %21, %20 : vector<16x128xf32>
      %23 = math.exp %22 : vector<16x128xf32>
      %cst_10 = arith.constant 1.000000e+00 : f32
      %24 = vector.broadcast %cst_10 : f32 to vector<16x128xf32>
      %25 = arith.subf %24, %23 : vector<16x128xf32>
      %26 = arith.mulf %25, %25 : vector<16x128xf32>
      %cst_11 = arith.constant 1.000000e+00 : f32
      %27 = vector.broadcast %cst_11 : f32 to vector<16x128xf32>
      %28 = arith.mulf %27, %26 : vector<16x128xf32>
      %29 = arith.mulf %28, %20 : vector<16x128xf32>
      %30 = tpu.iota {dimensions = array<i32: 0>} : vector<16x128xi32>
      %31 = tpu.iota {dimensions = array<i32: 1>} : vector<16x128xi32>
      %c16_i32 = arith.constant 16 : i32
      %32 = arith.muli %arg0, %c16_i32 : i32
      %33 = vector.broadcast %32 : i32 to vector<16x128xi32>
      %34 = arith.addi %33, %30 : vector<16x128xi32>
      %c128_i32 = arith.constant 128 : i32
      %35 = vector.broadcast %c128_i32 : i32 to vector<16x128xi32>
      %36 = arith.muli %34, %35 : vector<16x128xi32>
      %37 = arith.addi %36, %31 : vector<16x128xi32>
      %c2048_i32 = arith.constant 2048 : i32
      %38 = vector.broadcast %c2048_i32 : i32 to vector<16x128xi32>
      %39 = arith.cmpi slt, %37, %38 : vector<16x128xi32>
      %cst_12 = arith.constant 0.000000e+00 : f32
      %40 = vector.broadcast %cst_12 : f32 to vector<16x128xf32>
      %41 = arith.select %39, %29, %40 : vector<16x128xi1>, vector<16x128xf32>
      %c0_13 = arith.constant 0 : index
      %c0_14 = arith.constant 0 : index
      %42 = vector.load %arg3[%c0_13, %c0_14] : memref<8x128xf32, #tpu.memory_space<vmem>>, vector<8x128xf32>
      %43 = vector.shape_cast %41 : vector<16x128xf32> to vector<2x8x128xf32>
      %cst_15 = arith.constant dense<0.000000e+00> : vector<8x128xf32>
      %44 = vector.multi_reduction <add>, %43, %cst_15 [0] : vector<2x8x128xf32> to vector<8x128xf32>
      %45 = arith.addf %42, %44 : vector<8x128xf32>
      %c0_16 = arith.constant 0 : index
      %c0_17 = arith.constant 0 : index
      %46 = vector.load %arg3[%c0_16, %c0_17] : memref<8x128xf32, #tpu.memory_space<vmem>>, vector<8x128xf32>
      tpu.vector_store %arg3[%c0_16, %c0_17], %45 {strides = array<i32>} : memref<8x128xf32, #tpu.memory_space<vmem>>, vector<8x128xf32>,
    } else {
    }
    return
  }
  func.func @transform_0(%arg0: i32) -> (i32, i32) {
    %c0_i32 = arith.constant 0 : i32
    %c0_i32_0 = arith.constant 0 : i32
    return %arg0, %c0_i32 : i32, i32
  }
  func.func @transform_1(%arg0: i32) -> (i32, i32) {
    %c0_i32 = arith.constant 0 : i32
    %c0_i32_0 = arith.constant 0 : i32
    return %arg0, %c0_i32 : i32, i32
  }
  func.func @transform_2(%arg0: i32) -> (i32, i32) {
    %c0_i32 = arith.constant 0 : i32
    %c0_i32_0 = arith.constant 0 : i32
    %c0_i32_1 = arith.constant 0 : i32
    return %c0_i32, %c0_i32_0 : i32, i32
  }
}

</mosaic_0001>

<bundles_post_ra>
// kernel: tpu_custom_call.1
= control target key start
LH: loop header
LB: loop body
LE: loop exit
PB: predicated region body
PF: predicated region fallthrough
CT: control target
= control target key end

     0   :  { %7 = vsyncpa [#allocation3], 0  ;;  %s306_s0 = inlined_call_operand.hbm [shape: f32[16,128], index: 0, kind: input, shape index: {}]   ;;  %s307_s1 = inlined_call_operand.hbm [shape: f32[16,128], index: 1, kind: input, shape index: {}]   ;;  %s308_s2 = inlined_call_operand.hbm [shape: f32[8,128], index: 2, kind: output, shape index: {}]  }
   0x1   :  { %8 = vsyncpa [#allocation6], 0 }
   0x2   :  { %9 = vsyncpa [#allocation4], 0  ;;  %s277_s9 = smov [#allocation2]  }
   0x3   :  { %s15_s10 = sshll.u32 %s277_s9, 4  ;;  %s16_s10 = int_to_ptr.vmem [resolvable:$true] %s15_s10 }
   0x4   :  { %s219_s11 = scalar_lea.vmem %s16_s10, 256  ;;  %p224_p1 = scmp.lt.s32.totalorder %s16_s10, %s16_s10 }
   0x5   :  { %p220_p0 = scmp.ne.s32.totalorder %s16_s10, %s219_s11  ;;  %p225_p2 = scmp.lt.s32.totalorder %s219_s11, %s219_s11 }
   0x7   :  { %p226_p3 = por %p225_p2, %p224_p1 }
   0x9   :  { %p227_p4 = pnand %p226_p3, %p220_p0 }
   0xb   :  { %230 = shalt.err (!%p227_p4)
}
   0xc   :  { %s278_s12 = smov 128   ;;  %s279_s13 = smov 8  }
   0xd   :  { %21 = dma.hbm_to_vmem [thread:$0]  %s306_s0, 256, %s16_s10, [#allocation3], %s278_s12, %s278_s12, %s279_s13  }
   0xe   :  { %s280_s16 = smov [#allocation5]  }
   0xf   :  { %s27_s17 = sshll.u32 %s280_s16, 4  ;;  %s28_s17 = int_to_ptr.vmem [resolvable:$true] %s27_s17 }
  0x10   :  { %s239_s18 = scalar_lea.vmem %s28_s17, 256  ;;  %p244_p6 = scmp.lt.s32.totalorder %s28_s17, %s28_s17 }
  0x11   :  { %p240_p5 = scmp.ne.s32.totalorder %s28_s17, %s239_s18  ;;  %p245_p7 = scmp.lt.s32.totalorder %s239_s18, %s239_s18 }
  0x13   :  { %p246_p8 = por %p245_p7, %p244_p6 }
  0x15   :  { %p247_p9 = pnand %p246_p8, %p240_p5 }
  0x17   :  { %250 = shalt.err (!%p247_p9)
}
  0x18   :  { %33 = dma.hbm_to_vmem [thread:$0]  %s307_s1, 256, %s28_s17, [#allocation6], %s278_s12, %s278_s12, %s279_s13  }
  0x19   :  { %271 = dma.done.wait [#allocation3], 256  }
  0x1a   :  { %272 = vsyncadd [#allocation3], 4294967040 }
  0x1b   :  { %273 = dma.done.wait [#allocation6], 256  }
  0x1c   :  { %274 = vsyncadd [#allocation6], 4294967040  ;;  %v106_v0 = vld [vmem:[#allocation2] sm:$0xff]  ;;  %v107_v1 = vld [vmem:[#allocation2 + $0x8] sm:$0xff]  ;;  %v156_v39 = vlaneseq  ;;  %s281_s0 = smov [#allocation7]  }
  0x1d   :  { %v116_v2 = vand.u32 2147483647, %v106_v0  ;;  %v117_v3 = vand.u32 2147483647, %v107_v1  ;;  %v108_v14 = vld [vmem:[#allocation5] sm:$0xff]  ;;  %v109_v15 = vld [vmem:[#allocation5 + $0x8] sm:$0xff] }
  0x1e   :  { %v110_v17 = vmax.f32 %v106_v0, 0.0  ;;  %v112_v18 = vmul.f32 %v108_v14, %v106_v0  ;;  %v111_v21 = vmax.f32 %v107_v1, 0.0  ;;  %v113_v22 = vmul.f32 %v109_v15, %v107_v1  ;;  %s183_s1 = sshll.u32 %s281_s0, 4  ;;  %s184_s1 = int_to_ptr.vmem [resolvable:$true] %s183_s1 }
  0x1f   :  { %v118_v4 = vsub.f32 0.0, %v116_v2  ;;  %v119_v5 = vsub.f32 0.0, %v117_v3  ;;  %v157_v41 = vshrl.u32 %v156_v39, 7  ;;  %v160_v43 = vand.u32 127, %v156_v39  ;;  %s251_s21 = scalar_lea.vmem %s184_s1, 128  ;;  %p256_p11 = scmp.lt.s32.totalorder %s184_s1, %s184_s1 }
  0x20   :  { %v114_v26 = vsub.f32 %v110_v17, %v112_v18  ;;  %v115_v29 = vsub.f32 %v111_v21, %v113_v22  ;;  %p252_p10 = scmp.ne.s32.totalorder %s184_s1, %s251_s21  ;;  %p257_p12 = scmp.lt.s32.totalorder %s251_s21, %s251_s21 }
  0x21   :  { %v120_v6 = vmul.f32 1.442695, %v118_v4  ;;  %v122_v7 = vmul.f32 1.442695, %v119_v5  ;;  %v158_v42 = vadd.s32 8, %v157_v41  ;;  %v165_v44 = vmul.u32 128, %v157_v41 }
  0x22   :  { %p258_p13 = por %p257_p12, %p256_p11 }
  0x23   :  { %199 = vpow2.f32 %v120_v6  ;;  %v166_v45 = vmul.u32 128, %v158_v42  ;;  %v167_v47 = vadd.s32 %v165_v44, %v160_v43 }
  0x24   :  { %201 = vpow2.f32 %v122_v7  ;;  %p259_p0 = pnand %p258_p13, %p252_p10 }
  0x25   :  { %v168_v50 = vadd.s32 %v166_v45, %v160_v43  ;;  %vm169_vm2 = vcmp.lt.s32.totalorder %v167_v47, 2048 }
  0x27   :  { %vm170_vm3 = vcmp.lt.s32.totalorder %v168_v50, 2048 }
  0x30   :  { %v200_v8 = vpop.eup %199 }
  0x31   :  { %v202_v9 = vpop.eup %201  ;;  %v124_v10 = vadd.f32 1.0, %v200_v8  ;;  %v127_v12 = vmul.f32 -0.5, %v200_v8  ;;  %v130_v19 = vand.u32 2147483647, %v200_v8 }
  0x32   :  { %v133_v11 = vadd.f32 1.0, %v202_v9  ;;  %v136_v13 = vmul.f32 -0.5, %v202_v9  ;;  %v139_v23 = vand.u32 2147483647, %v202_v9 }
  0x33   :  { %203 = vlog2.f32 %v124_v10  ;;  %v128_v16 = vadd.f32 1.0, %v127_v12  ;;  %vm131_vm0 = vcmp.lt.f32.partialorder %v130_v19, 0.0004427343 }
  0x34   :  { %205 = vlog2.f32 %v133_v11  ;;  %v137_v20 = vadd.f32 1.0, %v136_v13  ;;  %vm140_vm1 = vcmp.lt.f32.partialorder %v139_v23, 0.0004427343 }
  0x35   :  { %v129_v24 = vmul.f32 %v200_v8, %v128_v16 }
  0x36   :  { %v138_v27 = vmul.f32 %v202_v9, %v137_v20 }
  0x40   :  { %v204_v25 = vpop.eup %203 }
  0x41   :  { %v206_v28 = vpop.eup %205  ;;  %v126_v30 = vmul.f32 0.6931472, %v204_v25 }
  0x42   :  { %v135_v31 = vmul.f32 0.6931472, %v206_v28 }
  0x43   :  { %v132_v32 = vsel %vm131_vm0, %v129_v24, %v126_v30 }
  0x44   :  { %v141_v33 = vsel %vm140_vm1, %v138_v27, %v135_v31  ;;  %v142_v34 = vadd.f32 %v132_v32, %v114_v26 }
  0x45   :  { %v143_v35 = vadd.f32 %v141_v33, %v115_v29 }
  0x46   :  { %v144_v36 = vsub.f32 0.0, %v142_v34 }
  0x47   :  { %v145_v37 = vsub.f32 0.0, %v143_v35 }
  0x48   :  { %v146_v38 = vmul.f32 1.442695, %v144_v36 }
  0x49   :  { %v148_v40 = vmul.f32 1.442695, %v145_v37 }
  0x4a   :  { %207 = vpow2.f32 %v146_v38 }
  0x4b   :  { %209 = vpow2.f32 %v148_v40 }
  0x57   :  { %v208_v46 = vpop.eup %207 }
  0x58   :  { %v210_v48 = vpop.eup %209  ;;  %v150_v49 = vsub.f32 1.0, %v208_v46 }
  0x59   :  { %v151_v51 = vsub.f32 1.0, %v210_v48 }
  0x5a   :  { %v152_v52 = vmul.f32 %v150_v49, %v150_v49 }
  0x5b   :  { %v153_v53 = vmul.f32 %v151_v51, %v151_v51 }
  0x5c   :  { %v154_v54 = vmul.f32 %v152_v52, %v142_v34 }
  0x5d   :  { %v155_v55 = vmul.f32 %v153_v53, %v143_v35 }
  0x5e   :  { %v171_v56 = vsel %vm169_vm2, %v154_v54, 0.0 }
  0x5f   :  { %v172_v57 = vsel %vm170_vm3, %v155_v55, 0.0 }
  0x60   :  { %v174_v58 = vadd.f32 %v172_v57, %v171_v56 }
  0x62   :  { %176 = vst [vmem:[#allocation7] sm:$0xff] %v174_v58 }
  0x63   :  { %262 = shalt.err (!%p259_p0)
}
  0x64   :  { %186 = dma.vmem_to_hbm [thread:$0]  %s184_s1, 128, %s308_s2, [#allocation4]  }
  0x65   :  { %275 = dma.done.wait [#allocation4], 128  }
  0x66   :  { %276 = vsyncadd [#allocation4], 4294967168 }
  0x67   :  { %190 = vsyncpa [#allocation3], 1 }
  0x68   :  { %191 = vsyncpa [#allocation6], 1 }
  0x69   :  { %192 = vsyncpa [#allocation4], 1 }

</bundles_post_ra>
